<compile_context>
chip_gen: v5e
topology: v5e:2x2
jax: 0.10.0
libtpu: 0.0.40
codegen_flags: <defaults>
</compile_context>

<pallas_src>
import math
import functools

import jax
import jax.numpy as jnp
from jax.experimental import pallas as pl
from jax.experimental.pallas import tpu as pltpu


# ---------------------------------------------------------------------------
# Bit handling (mimics int(round(param_to_bit(bit_to_param(bits)))))
# ---------------------------------------------------------------------------
def _bits_to_qmax(bits):
    bits_int = int(round(math.exp(math.log(float(bits)))))
    return float(2 ** bits_int - 1)


# ---------------------------------------------------------------------------
# Kernel 1: tiled elementwise fake fixed-point quantization.
#   scal = [vmin, scale = qmax/(vmax-vmin), inv_scale = (vmax-vmin)/qmax]
# ---------------------------------------------------------------------------
def _quant_kernel(scal_ref, x_ref, o_ref, *, qmax):
    vmin = scal_ref[0]
    scale = scal_ref[1]
    inv_scale = scal_ref[2]
    q = jnp.clip(jnp.round((x_ref[...] - vmin) * scale), 0.0, qmax)
    o_ref[...] = (q * inv_scale + vmin).astype(o_ref.dtype)


def _fake_quant_array(x, vmin, vmax, qmax, *, out_dtype=jnp.float32,
                      lanes=512, max_block_rows=1024):
    """Fake-quantize an arbitrary-shape array with a tiled Pallas kernel."""
    orig_shape = x.shape
    flat = x.reshape(-1).astype(jnp.float32)
    total = flat.shape[0]

    if total < lanes:
        lanes = 128
    n_rows = -(-total // lanes)
    # multiple of 16 so blocks are also valid for bf16 (16,128) tiling
    block_rows = min(max_block_rows, ((n_rows + 15) // 16) * 16)
    n_rows_pad = -(-n_rows // block_rows) * block_rows
    pad_elems = n_rows_pad * lanes - total
    if pad_elems:
        flat = jnp.pad(flat, (0, pad_elems))
    x2 = flat.reshape(n_rows_pad, lanes)

    denom = vmax - vmin
    # Guard the degenerate (constant tensor) range: output equals the input.
    # (PyTorch's fake_fixed_truncate2 would produce NaN here.)
    safe = jnp.where(denom == 0.0, jnp.float32(1.0), denom)
    scal = jnp.stack([vmin, qmax / safe, safe / qmax]).astype(jnp.float32)

    out = pl.pallas_call(
        functools.partial(_quant_kernel, qmax=qmax),
        out_shape=jax.ShapeDtypeStruct((n_rows_pad, lanes), out_dtype),
        grid=(n_rows_pad // block_rows,),
        in_specs=[
            pl.BlockSpec(memory_space=pltpu.MemorySpace.SMEM),
            pl.BlockSpec((block_rows, lanes), lambda i: (i, 0)),
        ],
        out_specs=pl.BlockSpec((block_rows, lanes), lambda i: (i, 0)),
        compiler_params=pltpu.CompilerParams(
            dimension_semantics=("parallel",)),
    )(scal, x2)

    out_flat = out.reshape(-1)
    if pad_elems:
        out_flat = out_flat[:total]
    return out_flat.reshape(orig_shape)


# ---------------------------------------------------------------------------
# Kernel 2: fused im2col conv as KH*KW shifted matmuls + bias add.
#   x_ref: (1, H_pad, W_pad, C)   quantized, zero-padded, bf16
#   w_ref: (KH*KW, C, OC_pad)     quantized, lane-dense, bf16
#   b_ref: (1, OC_pad)            quantized bias, f32
#   o_ref: (1, OH*OW, OC_pad)     f32, lane-dense
# ---------------------------------------------------------------------------
def _conv_kernel(x_ref, w_ref, b_ref, o_ref, *, KH, KW, OH, OW):
    acc = None
    for kh in range(KH):
        for kw in range(KW):
            a = x_ref[0, kh:kh + OH, kw:kw + OW, :]      # (OH, OW, C) bf16
            a2 = a.reshape(OH * OW, a.shape[-1])         # (OH*OW, C)
            p = jnp.dot(a2, w_ref[kh * KW + kw],
                        preferred_element_type=jnp.float32)
            acc = p if acc is None else acc + p
    o_ref[0] = acc + b_ref[...]


# ---------------------------------------------------------------------------
# Wrapper: QuantWrapperFixedPoint2.forward for a wrapped nn.Conv2d
# ---------------------------------------------------------------------------
def quant_wrapper_fixed_point2_conv2d(x, w, b, *, act_bits, weight_bits,
                                      stride=1, padding=1):
    """x: (N, C, H, W) NCHW; w: (OC, C, KH, KW); b: (OC,). Returns (N, OC, OH, OW)."""
    N, C, H, W = x.shape
    OC, _, KH, KW = w.shape
    assert stride == 1, "fused conv kernel implements stride=1 (demo module)"
    # TODO(synk): general stride / dilation / groups of nn.Conv2d not covered.

    x = x.astype(jnp.float32)
    w = w.astype(jnp.float32)
    b = b.astype(jnp.float32)

    # MinMaxObserver equivalents (detach().min()/max() — glue reductions)
    x_min, x_max = jnp.min(x), jnp.max(x)
    w_min, w_max = jnp.min(w), jnp.max(w)
    b_min, b_max = jnp.min(b), jnp.max(b)

    x_qmax = _bits_to_qmax(act_bits)
    w_qmax = _bits_to_qmax(weight_bits)
    b_qmax = _bits_to_qmax(weight_bits)   # bias_bits_param uses weight_bits

    # --- fake-quant (tiled Pallas elementwise kernels), hoisted out of the GEMM
    x_q = _fake_quant_array(x, x_min, x_max, x_qmax, out_dtype=jnp.bfloat16)
    w_q = _fake_quant_array(w, w_min, w_max, w_qmax, out_dtype=jnp.float32)
    b_q = _fake_quant_array(b, b_min, b_max, b_qmax, out_dtype=jnp.float32)

    OH = (H + 2 * padding - KH) // stride + 1
    OW = (W + 2 * padding - KW) // stride + 1
    H_pad, W_pad = H + 2 * padding, W + 2 * padding

    # NHWC + zero pad AFTER quantization (padding zeros stay exact zeros,
    # matching F.conv2d).  No im2col patch matrix is materialized.
    x_nhwc = jnp.transpose(x_q, (0, 2, 3, 1))
    xp = jnp.pad(x_nhwc, ((0, 0), (padding, padding), (padding, padding), (0, 0)))

    # weight: (OC, C, KH, KW) -> (KH*KW, C, OC_pad), lane-dense OC, bf16
    OC_pad = max(128, ((OC + 127) // 128) * 128)
    w_t = jnp.transpose(w_q, (2, 3, 1, 0)).reshape(KH * KW, C, OC)
    w_t = jnp.pad(w_t, ((0, 0), (0, 0), (0, OC_pad - OC))).astype(jnp.bfloat16)
    b_t = jnp.pad(b_q.reshape(1, OC), ((0, 0), (0, OC_pad - OC)))

    out = pl.pallas_call(
        functools.partial(_conv_kernel, KH=KH, KW=KW, OH=OH, OW=OW),
        out_shape=jax.ShapeDtypeStruct((N, OH * OW, OC_pad), jnp.float32),
        grid=(N,),
        in_specs=[
            pl.BlockSpec((1, H_pad, W_pad, C), lambda n: (n, 0, 0, 0)),
            pl.BlockSpec((KH * KW, C, OC_pad), lambda n: (0, 0, 0)),
            pl.BlockSpec((1, OC_pad), lambda n: (0, 0)),
        ],
        out_specs=pl.BlockSpec((1, OH * OW, OC_pad), lambda n: (n, 0, 0)),
        compiler_params=pltpu.CompilerParams(
            dimension_semantics=("parallel",),
            vmem_limit_bytes=32 * 1024 * 1024),
    )(xp, w_t, b_t)

    # slice off OC padding and return NCHW like the PyTorch module.
    out = out[:, :, :OC].reshape(N, OH, OW, OC)
    return jnp.transpose(out, (0, 3, 1, 2))


# TODO(synk): only the forward pass is implemented; the custom autograd
# (FakeFixedFunction2.backward finite-difference w.r.t. bits) and the
# nn.Linear branch are not translated (Conv2d is the wrapped module here).


# ---------------------------------------------------------------------------
# Pure-JAX reference (same math, bf16 operand path) for a sanity check
# ---------------------------------------------------------------------------
def _fake_quant_ref(x, vmin, vmax, qmax):
    denom = vmax - vmin
    safe = jnp.where(denom == 0.0, jnp.float32(1.0), denom)
    q = jnp.clip(jnp.round((x - vmin) * (qmax / safe)), 0.0, qmax)
    return q * (safe / qmax) + vmin


def _reference_forward(x, w, b, *, act_bits, weight_bits, stride, padding):
    xq = _fake_quant_ref(x, jnp.min(x), jnp.max(x), _bits_to_qmax(act_bits))
    wq = _fake_quant_ref(w, jnp.min(w), jnp.max(w), _bits_to_qmax(weight_bits))
    bq = _fake_quant_ref(b, jnp.min(b), jnp.max(b), _bits_to_qmax(weight_bits))
    xq = xq.astype(jnp.bfloat16).astype(jnp.float32)
    wq = wq.astype(jnp.bfloat16).astype(jnp.float32)
    out = jax.lax.conv_general_dilated(
        xq, wq, window_strides=(stride, stride),
        padding=((padding, padding), (padding, padding)),
        dimension_numbers=("NCHW", "OIHW", "NCHW"),
        precision=jax.lax.Precision.HIGHEST)
    return out + bq.reshape(1, -1, 1, 1)


if __name__ == "__main__":
    key = jax.random.PRNGKey(0)
    kx, kw, kb = jax.random.split(key, 3)

    # QuantWrapperFixedPoint2(nn.Conv2d(4, 8, 3, stride=1, padding=1),
    #                         weight_bits=8, act_bits=8)
    N, C, H, W = 2, 4, 16, 16
    OC, KH, KW = 8, 3, 3

    x = jax.random.normal(kx, (N, C, H, W), dtype=jnp.float32)
    w = 0.1 * jax.random.normal(kw, (OC, C, KH, KW), dtype=jnp.float32)
    b = 0.1 * jax.random.normal(kb, (OC,), dtype=jnp.float32)

    out = quant_wrapper_fixed_point2_conv2d(
        x, w, b, act_bits=8, weight_bits=8, stride=1, padding=1)
    out = jax.block_until_ready(out)
    assert out.shape == (N, OC, H, W)

    ref = _reference_forward(x, w, b, act_bits=8, weight_bits=8,
                             stride=1, padding=1)
    max_err = float(jnp.max(jnp.abs(out - ref)))
    assert max_err < 5e-2, f"mismatch vs reference: {max_err}"

    print("KERNEL_OK")
</pallas_src>

<mosaic_0001>
module attributes {stable_mosaic.version = 11 : i64} {
  func.func @_quant_kernel(%arg0: i32, %arg1: memref<3xf32, #tpu.memory_space<smem>>, %arg2: memref<16x512xf32, #tpu.memory_space<vmem>>, %arg3: memref<16x512xbf16, #tpu.memory_space<vmem>>) attributes {dimension_semantics = [#tpu.dimension_semantics<parallel>], iteration_bounds = array<i64: 1>, scalar_prefetch = 0 : i64, scratch_operands = 0 : i64, tpu.core_type = #tpu.core_type<tc>, window_params = [{transform_indices = @transform_0, window_bounds = array<i64: 3>}, {transform_indices = @transform_1, window_bounds = array<i64: 16, 512>}, {transform_indices = @transform_2, window_bounds = array<i64: 16, 512>}]} {
    %c0 = arith.constant 0 : index
    %0 = memref.load %arg1[%c0] : memref<3xf32, #tpu.memory_space<smem>>
    %c1 = arith.constant 1 : index
    %1 = memref.load %arg1[%c1] : memref<3xf32, #tpu.memory_space<smem>>
    %c2 = arith.constant 2 : index
    %2 = memref.load %arg1[%c2] : memref<3xf32, #tpu.memory_space<smem>>
    %c0_0 = arith.constant 0 : index
    %c0_1 = arith.constant 0 : index
    %3 = vector.load %arg2[%c0_0, %c0_1] : memref<16x512xf32, #tpu.memory_space<vmem>>, vector<16x512xf32>
    %4 = vector.broadcast %0 : f32 to vector<16x512xf32>
    %5 = arith.subf %3, %4 : vector<16x512xf32>
    %6 = vector.broadcast %1 : f32 to vector<16x512xf32>
    %7 = arith.mulf %5, %6 : vector<16x512xf32>
    %8 = math.roundeven %7 : vector<16x512xf32>
    %cst = arith.constant 0.000000e+00 : f32
    %cst_2 = arith.constant 2.550000e+02 : f32
    %9 = vector.broadcast %cst : f32 to vector<16x512xf32>
    %10 = arith.maximumf %9, %8 : vector<16x512xf32>
    %11 = vector.broadcast %cst_2 : f32 to vector<16x512xf32>
    %12 = arith.minimumf %11, %10 : vector<16x512xf32>
    %13 = vector.broadcast %2 : f32 to vector<16x512xf32>
    %14 = arith.mulf %12, %13 : vector<16x512xf32>
    %15 = vector.broadcast %0 : f32 to vector<16x512xf32>
    %16 = arith.addf %14, %15 : vector<16x512xf32>
    %17 = arith.truncf %16 : vector<16x512xf32> to vector<16x512xbf16>
    %c0_3 = arith.constant 0 : index
    %c0_4 = arith.constant 0 : index
    %18 = vector.load %arg3[%c0_3, %c0_4] : memref<16x512xbf16, #tpu.memory_space<vmem>>, vector<16x512xbf16>
    tpu.vector_store %arg3[%c0_3, %c0_4], %17 {strides = array<i32>} : memref<16x512xbf16, #tpu.memory_space<vmem>>, vector<16x512xbf16>,
    return
  }
  func.func @transform_0(%arg0: i32) -> i32 {
    %c0_i32 = arith.constant 0 : i32
    %c0_i32_0 = arith.constant 0 : i32
    return %c0_i32 : i32
  }
  func.func @transform_1(%arg0: i32) -> (i32, i32) {
    %c0_i32 = arith.constant 0 : i32
    %c0_i32_0 = arith.constant 0 : i32
    return %arg0, %c0_i32 : i32, i32
  }
  func.func @transform_2(%arg0: i32) -> (i32, i32) {
    %c0_i32 = arith.constant 0 : i32
    %c0_i32_0 = arith.constant 0 : i32
    return %arg0, %c0_i32 : i32, i32
  }
}

</mosaic_0001>

<bundles_post_ra>
// kernel: tpu_custom_call.1
= control target key start
LH: loop header
LB: loop body
LE: loop exit
PB: predicated region body
PF: predicated region fallthrough
CT: control target
= control target key end

     0   :  { %7 = vsyncpa [#allocation5], 0  ;;  %s392_s0 = inlined_call_operand.hbm [shape: f32[3], index: 0, kind: input, shape index: {}]   ;;  %s393_s1 = inlined_call_operand.hbm [shape: f32[16,512], index: 1, kind: input, shape index: {}]   ;;  %s394_s2 = inlined_call_operand.hbm [shape: bf16[16,512], index: 2, kind: output, shape index: {}]  }
   0x1   :  { %8 = vsyncpa [#allocation3], 0 }
   0x2   :  { %9 = vsyncpa [#allocation4], 0  ;;  %s15_s11 = sshll.u32 %s392_s0, 4  ;;  %s23_s14 = sshll.u32 %s393_s1, 4  ;;  %s16_s11 = int_to_ptr.hbm [resolvable:$true] %s15_s11  ;;  %s24_s14 = int_to_ptr.hbm [resolvable:$true] %s23_s14 }
   0x3   :  { %s278_s15 = smov [#allocation2]   ;;  %s279_s16 = smov [#allocation6]  }
   0x4   :  { %18 = dma.hbm_to_smem %s16_s11, 16, %s278_s15, [#allocation5]  }
   0x5   :  { %s25_s17 = sshll.u32 %s279_s16, 4  ;;  %s280_s18 = smov 512   ;;  %s26_s17 = int_to_ptr.vmem [resolvable:$true] %s25_s17 }
   0x6   :  { %s281_s19 = smov 32  }
   0x7   :  { %31 = dma.hbm_to_vmem [thread:$0]  %s24_s14, 1024, %s26_s17, [#allocation3], %s280_s18, %s280_s18, %s281_s19  }
   0x8   :  { %272 = dma.done.wait [#allocation5], 16  }
   0x9   :  { %273 = vsyncadd [#allocation5], 4294967280 }
   0xa   :  { %274 = dma.done.wait [#allocation3], 1024  }
   0xb   :  { %275 = vsyncadd [#allocation3], 4294966272 }
   0xc   :  { %40 = sfence }
   0xd   :  { %s41_s0 = sld [smem:[#allocation2]]  ;;  %v44_v0 = vld [vmem:[#allocation6] sm:$0xff]  ;;  %v45_v1 = vld [vmem:[#allocation6 + $0x8] sm:$0xff]  ;;  %v46_v2 = vld [vmem:[#allocation6 + $0x10] sm:$0xff]  ;;  %s282_s1 = smov [#allocation7]  }
   0xe   :  { %s139_s20 = sld [smem:[#allocation2 + $0x1]]  ;;  %v47_v3 = vld [vmem:[#allocation6 + $0x18] sm:$0xff]  ;;  %v48_v4 = vld [vmem:[#allocation6 + $0x20] sm:$0xff]  ;;  %v49_v5 = vld [vmem:[#allocation6 + $0x28] sm:$0xff]  ;;  %s123_s22 = sshll.u32 %s282_s1, 4  ;;  %s124_s22 = int_to_ptr.vmem [resolvable:$true] %s123_s22 }
   0xf   :  { %s140_s21 = sld [smem:[#allocation2 + $0x2]]  ;;  %v50_v11 = vld [vmem:[#allocation6 + $0x30] sm:$0xff]  ;;  %v316_v15 = vld [vmem:[#allocation6 + $0x38] sm:$0xff]  ;;  %s125_s25 = sshll.u32 %s394_s2, 4  ;;  %s126_s25 = int_to_ptr.hbm [resolvable:$true] %s125_s25 }
  0x10   :  { %s283_s26 = smov 256   ;;  %s284_s27 = smov 16  }
  0x13   :  { %v306_v6 = vstv %s41_s0 }
  0x14   :  { %v53_v7 = vsub.f32 %v44_v0, %v306_v6  ;;  %v54_v8 = vsub.f32 %v45_v1, %v306_v6  ;;  %v310_v9 = vstv %s139_s20  ;;  %v55_v10 = vsub.f32 %v46_v2, %v306_v6 }
  0x15   :  { %v56_v12 = vsub.f32 %v47_v3, %v306_v6  ;;  %v57_v13 = vsub.f32 %v48_v4, %v306_v6  ;;  %v58_v14 = vsub.f32 %v49_v5, %v306_v6  ;;  %v320_v18 = vstv %s140_s21 }
  0x16   :  { %v62_v16 = vmul.f32 %v310_v9, %v53_v7  ;;  %v63_v17 = vmul.f32 %v310_v9, %v54_v8  ;;  %v64_v19 = vmul.f32 %v310_v9, %v55_v10  ;;  %v59_v23 = vsub.f32 %v50_v11, %v306_v6 }
  0x17   :  { %v65_v20 = vmul.f32 %v310_v9, %v56_v12  ;;  %v66_v21 = vmul.f32 %v310_v9, %v57_v13  ;;  %v326_v22 = vmul.f32 %v310_v9, %v58_v14  ;;  %v60_v27 = vsub.f32 %v316_v15, %v306_v6 }
  0x18   :  { %v141_v24 = vand.u32 2147483647, %v62_v16  ;;  %v143_v25 = vcvt.f32.s32 %v62_v16  ;;  %v149_v26 = vand.u32 2147483647, %v63_v17  ;;  %v146_v28 = vand.u32 2147483648, %v62_v16 }
  0x19   :  { %v151_v29 = vcvt.f32.s32 %v63_v17  ;;  %v157_v30 = vand.u32 2147483647, %v64_v19  ;;  %v159_v31 = vcvt.f32.s32 %v64_v19  ;;  %v154_v35 = vand.u32 2147483648, %v63_v17 }
  0x1a   :  { %vm331_vm0 = vcmp.lt.f32.partialorder %v141_v24, 8388608.0  ;;  %v144_v33 = vcvt.s32.f32 %v143_v25  ;;  %vm335_vm1 = vcmp.lt.f32.partialorder %v149_v26, 8388608.0  ;;  %v162_v38 = vand.u32 2147483648, %v64_v19 }
  0x1b   :  { %v152_v36 = vcvt.s32.f32 %v151_v29  ;;  %v160_v37 = vcvt.s32.f32 %v159_v31  ;;  %v165_v39 = vand.u32 2147483647, %v65_v20  ;;  %vm339_vm2 = vcmp.lt.f32.partialorder %v157_v30, 8388608.0 }
  0x1c   :  { %v145_v40 = vand.u32 2147483647, %v144_v33  ;;  %v167_v42 = vcvt.f32.s32 %v65_v20  ;;  %v173_v43 = vand.u32 2147483647, %v66_v21  ;;  %v170_v46 = vand.u32 2147483648, %v65_v20 }
  0x1d   :  { %v153_v44 = vand.u32 2147483647, %v152_v36  ;;  %v161_v45 = vand.u32 2147483647, %v160_v37  ;;  %v175_v47 = vcvt.f32.s32 %v66_v21  ;;  %vm343_vm3 = vcmp.lt.f32.partialorder %v165_v39, 8388608.0 }
  0x1e   :  { %v147_v48 = vor.u32 %v146_v28, %v145_v40  ;;  %v168_v50 = vcvt.s32.f32 %v167_v42  ;;  %vm347_vm4 = vcmp.lt.f32.partialorder %v173_v43, 8388608.0  ;;  %v178_v55 = vand.u32 2147483648, %v66_v21 }
  0x1f   :  { %v155_v52 = vor.u32 %v154_v35, %v153_v44  ;;  %v163_v53 = vor.u32 %v162_v38, %v161_v45  ;;  %v176_v54 = vcvt.s32.f32 %v175_v47  ;;  %v181_v58 = vand.u32 2147483647, %v326_v22 }
  0x20   :  { %v148_v56 = vsel %vm331_vm0, %v147_v48, %v62_v16  ;;  %v169_v57 = vand.u32 2147483647, %v168_v50  ;;  %v183_v59 = vcvt.f32.s32 %v326_v22  ;;  %v186_v3 = vand.u32 2147483648, %v326_v22 }
  0x21   :  { %v156_v60 = vsel %vm335_vm1, %v155_v52, %v63_v17  ;;  %v78_v61 = vmax.f32 %v148_v56, 0.0  ;;  %v164_v62 = vsel %vm339_vm2, %v163_v53, %v64_v19  ;;  %v177_v63 = vand.u32 2147483647, %v176_v54 }
  0x22   :  { %v79_v0 = vmax.f32 %v156_v60, 0.0  ;;  %v171_v1 = vor.u32 %v170_v46, %v169_v57  ;;  %v80_v2 = vmax.f32 %v164_v62, 0.0  ;;  %v184_v7 = vcvt.s32.f32 %v183_v59 }
  0x23   :  { %v86_v4 = vmin.f32 %v78_v61, 255.0  ;;  %v179_v5 = vor.u32 %v178_v55, %v177_v63  ;;  %v68_v8 = vmul.f32 %v310_v9, %v59_v23  ;;  %vm363_vm5 = vcmp.lt.f32.partialorder %v181_v58, 8388608.0 }
  0x24   :  { %v87_v10 = vmin.f32 %v79_v0, 255.0  ;;  %v172_v11 = vsel %vm343_vm3, %v171_v1, %v65_v20  ;;  %v88_v12 = vmin.f32 %v80_v2, 255.0  ;;  %v185_v17 = vand.u32 2147483647, %v184_v7 }
  0x25   :  { %v95_v14 = vmul.f32 %v320_v18, %v86_v4  ;;  %v81_v15 = vmax.f32 %v172_v11, 0.0  ;;  %v180_v16 = vsel %vm347_vm4, %v179_v5, %v66_v21  ;;  %v69_v25 = vmul.f32 %v310_v9, %v60_v27 }
  0x26   :  { %v96_v19 = vmul.f32 %v320_v18, %v87_v10  ;;  %v97_v23 = vmul.f32 %v320_v18, %v88_v12  ;;  %v82_v24 = vmax.f32 %v180_v16, 0.0  ;;  %v187_v28 = vor.u32 %v186_v3, %v185_v17 }
  0x27   :  { %v103_v20 = vadd.f32 %v95_v14, %v306_v6  ;;  %v89_v26 = vmin.f32 %v81_v15, 255.0  ;;  %v191_v29 = vcvt.f32.s32 %v68_v8  ;;  %v189_v33 = vand.u32 2147483647, %v68_v8 }
  0x28   :  { %v104_v30 = vadd.f32 %v96_v19, %v306_v6  ;;  %v105_v31 = vadd.f32 %v97_v23, %v306_v6  ;;  %v90_v32 = vmin.f32 %v82_v24, 255.0  ;;  %v188_v34 = vsel %vm363_vm5, %v187_v28, %v326_v22 }
  0x29   :  { %v98_v21 = vmul.f32 %v320_v18, %v89_v26  ;;  %v192_v35 = vcvt.s32.f32 %v191_v29  ;;  %v194_v36 = vand.u32 2147483648, %v68_v8  ;;  %v83_v27 = vmax.f32 %v188_v34, 0.0 }
  0x2a   :  { %v111_v9 = vpack.c.bf16 %v104_v30, %v103_v20  ;;  %v99_v37 = vmul.f32 %v320_v18, %v90_v32  ;;  %v199_v40 = vcvt.f32.s32 %v69_v25  ;;  %vm190_vm6 = vcmp.lt.f32.partialorder %v189_v33, 8388608.0 }
  0x2b   :  { %v106_v38 = vadd.f32 %v98_v21, %v306_v6  ;;  %v193_v39 = vand.u32 2147483647, %v192_v35  ;;  %v91_v41 = vmin.f32 %v83_v27, 255.0  ;;  %v197_v42 = vand.u32 2147483647, %v69_v25 }
  0x2c   :  { %115 = vst [vmem:[#allocation7] sm:$0xff] %v111_v9  ;;  %v200_v45 = vcvt.s32.f32 %v199_v40  ;;  %v202_v46 = vand.u32 2147483648, %v69_v25  ;;  %v107_v47 = vadd.f32 %v99_v37, %v306_v6 }
  0x2d   :  { %v112_v43 = vpack.c.bf16 %v106_v38, %v105_v31  ;;  %v195_v44 = vor.u32 %v194_v36, %v193_v39  ;;  %v100_v22 = vmul.f32 %v320_v18, %v91_v41  ;;  %vm198_vm7 = vcmp.lt.f32.partialorder %v197_v42, 8388608.0 }
  0x2e   :  { %v201_v49 = vand.u32 2147483647, %v200_v45 }
  0x2f   :  { %116 = vst [vmem:[#allocation7 + $0x8] sm:$0xff] %v112_v43  ;;  %v196_v48 = vsel %vm190_vm6, %v195_v44, %v68_v8  ;;  %v108_v50 = vadd.f32 %v100_v22, %v306_v6 }
  0x30   :  { %v84_v51 = vmax.f32 %v196_v48, 0.0  ;;  %v203_v52 = vor.u32 %v202_v46, %v201_v49 }
  0x31   :  { %v113_v53 = vpack.c.bf16 %v108_v50, %v107_v47 }
  0x32   :  { %v92_v54 = vmin.f32 %v84_v51, 255.0  ;;  %v204_v55 = vsel %vm198_vm7, %v203_v52, %v69_v25 }
  0x33   :  { %117 = vst [vmem:[#allocation7 + $0x10] sm:$0xff] %v113_v53  ;;  %v85_v56 = vmax.f32 %v204_v55, 0.0 }
  0x34   :  { %v101_v57 = vmul.f32 %v320_v18, %v92_v54 }
  0x35   :  { %v93_v58 = vmin.f32 %v85_v56, 255.0 }
  0x36   :  { %v109_v60 = vadd.f32 %v101_v57, %v306_v6 }
  0x37   :  { %v102_v59 = vmul.f32 %v320_v18, %v93_v58 }
  0x39   :  { %v110_v61 = vadd.f32 %v102_v59, %v306_v6 }
  0x3b   :  { %v114_v62 = vpack.c.bf16 %v110_v61, %v109_v60 }
  0x3d   :  { %118 = vst [vmem:[#allocation7 + $0x18] sm:$0xff] %v114_v62 }
  0x3e   :  { %131 = dma.vmem_to_hbm [thread:$0]  %s124_s22, 512, %s126_s25, [#allocation4], %s283_s26, %s283_s26, %s284_s27  }
  0x3f   :  { %276 = dma.done.wait [#allocation4], 512  }
  0x40   :  { %277 = vsyncadd [#allocation4], 4294966784 }
  0x41   :  { %136 = vsyncpa [#allocation3], 1 }
  0x42   :  { %137 = vsyncpa [#allocation4], 1 }
  0x43   :  { %138 = vsyncpa [#allocation5], 1 }

</bundles_post_ra>
